<compile_context>
chip_gen: v7x
topology: tpu7x:2x2x1
jax: 0.10.0
libtpu: 0.0.40
codegen_flags: <defaults>
</compile_context>

<pallas_src>
import math
from functools import partial

import jax
import jax.numpy as jnp
from jax import lax
from jax.experimental import pallas as pl
from jax.experimental.pallas import tpu as pltpu


# --------------------------------------------------------------------------------------
# Kernel body
# --------------------------------------------------------------------------------------
def _rbf_kernel_body(gamma2_ref, x1_ref, x2t_ref, nsq1_ref, nsq2_ref, o_ref, *, precision):
    # gamma2_ref : (1,) f32 in SMEM, holds 2*gamma (runtime scalar -> no recompile per gamma)
    # x1_ref     : (1, TN, D)   native dtype
    # x2t_ref    : (1, D, TM)   native dtype (X2 pre-transposed -> MXU-native RHS layout)
    # nsq1_ref   : (1, TN, 1)   f32, holds -gamma * ||x1||^2   (hoisted to the wrapper)
    # nsq2_ref   : (1, 1, TM)   f32, holds -gamma * ||x2||^2   (hoisted to the wrapper)
    # o_ref      : (1, TN, TM)
    gamma2 = gamma2_ref[0]

    # Cross term on the MXU: (TN, D) @ (D, TM), f32 accumulation, no transpose in the body.
    cross = lax.dot_general(
        x1_ref[0], x2t_ref[0],
        dimension_numbers=(((1,), (0,)), ((), ())),
        preferred_element_type=jnp.float32,
        precision=precision,
    )                                                    # (TN, TM) f32

    # exponent = -gamma*||x1 - x2||^2 = 2*gamma*<x1,x2> - gamma*||x1||^2 - gamma*||x2||^2  (<= 0)
    arg = gamma2 * cross + nsq1_ref[0] + nsq2_ref[0]     # broadcasts (TN,1) + (1,TM)
    arg = jnp.minimum(arg, 0.0)                          # squared distance >= 0
    o_ref[0] = jnp.exp(arg).astype(o_ref.dtype)


# --------------------------------------------------------------------------------------
# Tiling / VMEM sizing helpers
# --------------------------------------------------------------------------------------
def _round_up(x: int, m: int) -> int:
    return ((x + m - 1) // m) * m


def _cdiv(a: int, b: int) -> int:
    return -(-a // b)


def _vmem_capacity_bytes() -> int:
    """Physical VMEM per TensorCore; conservative (v7x) fallback when unavailable."""
    try:
        info = pltpu.get_tpu_info()
        cap = getattr(info, "vmem_capacity_bytes", None)
        if cap:
            return int(cap)
    except Exception:
        pass
    return 64 * 1024 * 1024


def _need_bytes(tn: int, tm: int, d: int, in_item: int, out_item: int) -> int:
    """Double-buffered per-step VMEM footprint + in-kernel f32 temporaries (D-aware)."""
    x1b = tn * d * in_item
    x2b = d * tm * in_item
    n1b = tn * 128 * 4        # (TN, 1) f32, lane-padded to 128
    n2b = 8 * tm * 4          # (1, TM) f32, sublane-padded to 8
    ob = tn * tm * out_item
    temps = 3 * tn * tm * 4   # cross / arg / exp f32 temporaries
    return 2 * (x1b + x2b + n1b + n2b + ob) + temps


def _choose_tiles(n, m, d, b, in_item, out_item, budget, max_tn, max_tm=512):
    tn = min(max_tn, _round_up(n, 8))
    tm = min(max_tm, _round_up(m, 128))

    # Shrink until the D-aware footprint fits the VMEM budget.
    while _need_bytes(tn, tm, d, in_item, out_item) > budget and (tn > 8 or tm > 128):
        if tn >= tm and tn > 8:
            tn = max(8, _round_up(tn // 2, 8))
        elif tm > 128:
            tm = max(128, _round_up(tm // 2, 128))
        elif tn > 8:
            tn = max(8, _round_up(tn // 2, 8))
        else:
            break

    # Ensure at least 2 parallel grid iterations when possible (keeps v7x's 2nd TC busy).
    if b * _cdiv(n, tn) * _cdiv(m, tm) < 2:
        tn2 = _round_up(max(1, tn // 2), 8)
        tm2 = _round_up(max(1, tm // 2), 128)
        if tn2 < tn and _cdiv(n, tn2) >= 2:
            tn = tn2
        elif tm2 < tm and _cdiv(m, tm2) >= 2:
            tm = tm2

    return tn, tm


def _pad_axis(a, axis, target):
    pad = target - a.shape[axis]
    if pad == 0:
        return a
    widths = [(0, 0)] * a.ndim
    widths[axis] = (0, pad)
    return jnp.pad(a, widths)


# --------------------------------------------------------------------------------------
# pallas_call builder
# --------------------------------------------------------------------------------------
def _rbf_pallas(gamma2, x1p, x2t, nsq1, nsq2, *, TN, TM, out_dtype, vmem_limit, cost, precision):
    B, N_pad, D = x1p.shape
    M_pad = x2t.shape[-1]
    grid = (B, N_pad // TN, M_pad // TM)

    return pl.pallas_call(
        partial(_rbf_kernel_body, precision=precision),
        out_shape=jax.ShapeDtypeStruct((B, N_pad, M_pad), out_dtype),
        grid_spec=pltpu.PrefetchScalarGridSpec(
            num_scalar_prefetch=0,
            grid=grid,
            in_specs=[
                pl.BlockSpec(memory_space=pltpu.MemorySpace.SMEM),          # 2*gamma scalar
                pl.BlockSpec((1, TN, D), lambda b, i, j: (b, i, 0)),        # X1 tile
                pl.BlockSpec((1, D, TM), lambda b, i, j: (b, 0, j)),        # X2^T tile (lane-dense)
                pl.BlockSpec((1, TN, 1), lambda b, i, j: (b, i, 0)),        # -gamma*||x1||^2
                pl.BlockSpec((1, 1, TM), lambda b, i, j: (b, 0, j)),        # -gamma*||x2||^2
            ],
            out_specs=pl.BlockSpec((1, TN, TM), lambda b, i, j: (b, i, j)),
        ),
        compiler_params=pltpu.CompilerParams(
            dimension_semantics=("parallel", "parallel", "parallel"),
            vmem_limit_bytes=vmem_limit,
        ),
        cost_estimate=cost,
    )(gamma2, x1p, x2t, nsq1, nsq2)


# --------------------------------------------------------------------------------------
# Public wrapper (matches the PyTorch RBFKernel.forward contract)
# --------------------------------------------------------------------------------------
def rbf_kernel(X1, X2, gamma: float = 1.0, out_dtype=None):
    """K[..., i, j] = exp(-gamma * ||X1[..., i, :] - X2[..., j, :]||^2).

    X1: (..., N, D), X2: (..., M, D) with matching leading batch dims -> (..., N, M).
    """
    if gamma <= 0:
        raise ValueError("Gamma must be positive for RBF kernel.")
    if X1.shape[-1] != X2.shape[-1]:
        raise ValueError(
            "Input vectors must have the same feature dimension. "
            f"Got X1 dim {X1.shape[-1]} and X2 dim {X2.shape[-1]}")
    if X1.shape[:-2] != X2.shape[:-2]:
        raise ValueError("Leading batch dimensions of X1 and X2 must match.")

    batch_shape = X1.shape[:-2]
    N, D = X1.shape[-2:]
    M = X2.shape[-2]
    B = math.prod(batch_shape)  # == 1 for empty batch shape

    x1 = jnp.reshape(X1, (B, N, D))
    x2 = jnp.reshape(X2, (B, M, D))
    out_dtype = x1.dtype if out_dtype is None else jnp.dtype(out_dtype)

    in_item = jnp.dtype(x1.dtype).itemsize
    out_item = jnp.dtype(out_dtype).itemsize

    # ---- generation-aware tile + VMEM sizing -------------------------------------------
    vmem_cap = _vmem_capacity_bytes()
    max_tn = 1024 if vmem_cap >= (96 << 20) else 512       # bigger TN on 128-MiB parts
    budget = int(vmem_cap * 0.55)
    TN, TM = _choose_tiles(N, M, D, B, in_item, out_item, budget, max_tn)

    N_pad = _cdiv(N, TN) * TN
    M_pad = _cdiv(M, TM) * TM

    need = _need_bytes(TN, TM, D, in_item, out_item)
    vmem_limit = int(min(max(2 * need, 32 << 20), int(vmem_cap * 0.8)))

    # ---- wrapper-side prep: pad, transpose X2, hoist squared norms ---------------------
    gamma32 = jnp.float32(gamma)
    x1p = _pad_axis(x1, 1, N_pad)                                    # (B, N_pad, D)
    x2p = _pad_axis(x2, 1, M_pad)                                    # (B, M_pad, D)
    x2t = jnp.swapaxes(x2p, 1, 2)                                    # (B, D, M_pad) MXU-native RHS

    x1f = x1p.astype(jnp.float32)
    x2f = x2p.astype(jnp.float32)
    nsq1 = (-gamma32) * jnp.sum(x1f * x1f, axis=-1, keepdims=True)   # (B, N_pad, 1) f32
    nsq2 = ((-gamma32) * jnp.sum(x2f * x2f, axis=-1))[:, None, :]    # (B, 1, M_pad) f32

    gamma2 = jnp.asarray([2.0 * gamma], dtype=jnp.float32)           # runtime SMEM scalar

    # f32 inputs: full-precision MXU passes to match torch float32 numerics; bf16 stays native.
    precision = lax.Precision.HIGHEST if x1.dtype == jnp.float32 else None

    re_stream = N_pad // TN  # how many times x2 / nsq2 are re-fetched from HBM
    cost = pl.CostEstimate(
        flops=2 * B * N_pad * M_pad * D + 4 * B * N_pad * M_pad,
        transcendentals=B * N_pad * M_pad,
        bytes_accessed=int(
            B * N_pad * D * in_item
            + B * D * M_pad * in_item * re_stream
            + B * N_pad * 4
            + B * M_pad * 4 * re_stream
            + B * N_pad * M_pad * out_item),
    )

    out = _rbf_pallas(gamma2, x1p, x2t, nsq1, nsq2,
                      TN=TN, TM=TM, out_dtype=out_dtype,
                      vmem_limit=vmem_limit, cost=cost, precision=precision)

    out = out[:, :N, :M]
    return out.reshape(*batch_shape, N, M)


# --------------------------------------------------------------------------------------
# Self-test
# --------------------------------------------------------------------------------------
if __name__ == "__main__":
    key = jax.random.PRNGKey(0)
    k1, k2, k3, k4 = jax.random.split(key, 4)

    # Test 1: batched, tile-friendly shapes.
    B, N, M, D = 2, 16, 16, 32
    gamma = 1.5
    X1 = jax.random.normal(k1, (B, N, D), dtype=jnp.float32)
    X2 = jax.random.normal(k2, (B, M, D), dtype=jnp.float32)
    K = jax.block_until_ready(rbf_kernel(X1, X2, gamma=gamma))
    diff = X1[:, :, None, :] - X2[:, None, :, :]
    K_ref = jnp.exp(-gamma * jnp.sum(diff * diff, axis=-1))
    assert K.shape == (B, N, M)
    assert jnp.allclose(K, K_ref, atol=1e-5, rtol=1e-4), "batched test mismatch"

    # Test 2: no batch dims + awkward (non tile-aligned) N / M / D -> exercises padding path.
    N2, M2, D2 = 13, 20, 10
    gamma2 = 0.7
    Y1 = jax.random.normal(k3, (N2, D2), dtype=jnp.float32)
    Y2 = jax.random.normal(k4, (M2, D2), dtype=jnp.float32)
    K2 = jax.block_until_ready(rbf_kernel(Y1, Y2, gamma=gamma2))
    diff2 = Y1[:, None, :] - Y2[None, :, :]
    K2_ref = jnp.exp(-gamma2 * jnp.sum(diff2 * diff2, axis=-1))
    assert K2.shape == (N2, M2)
    assert jnp.allclose(K2, K2_ref, atol=1e-5, rtol=1e-4), "awkward-shape test mismatch"

    print("KERNEL_OK")
</pallas_src>

<mosaic_0001>
module attributes {stable_mosaic.version = 11 : i64} {
  func.func @_rbf_kernel_body(%arg0: i32, %arg1: i32, %arg2: i32, %arg3: memref<1xf32, #tpu.memory_space<smem>>, %arg4: memref<1x16x32xf32, #tpu.memory_space<vmem>>, %arg5: memref<1x32x128xf32, #tpu.memory_space<vmem>>, %arg6: memref<1x16x1xf32, #tpu.memory_space<vmem>>, %arg7: memref<1x1x128xf32, #tpu.memory_space<vmem>>, %arg8: memref<1x16x128xf32, #tpu.memory_space<vmem>>) attributes {dimension_semantics = [#tpu.dimension_semantics<parallel>, #tpu.dimension_semantics<parallel>, #tpu.dimension_semantics<parallel>], iteration_bounds = array<i64: 2, 1, 1>, scalar_prefetch = 0 : i64, scratch_operands = 0 : i64, tpu.core_type = #tpu.core_type<tc>, window_params = [{transform_indices = @transform_0, window_bounds = array<i64: 1>}, {transform_indices = @transform_1, window_bounds = array<i64: 1, 16, 32>}, {transform_indices = @transform_2, window_bounds = array<i64: 1, 32, 128>}, {transform_indices = @transform_3, window_bounds = array<i64: 1, 16, 1>}, {transform_indices = @transform_4, window_bounds = array<i64: 1, 1, 128>}, {transform_indices = @transform_5, window_bounds = array<i64: 1, 16, 128>}]} {
    %c0 = arith.constant 0 : index
    %0 = memref.load %arg3[%c0] : memref<1xf32, #tpu.memory_space<smem>>
    %c0_0 = arith.constant 0 : index
    %c0_1 = arith.constant 0 : index
    %c0_2 = arith.constant 0 : index
    %1 = vector.load %arg4[%c0_0, %c0_1, %c0_2] : memref<1x16x32xf32, #tpu.memory_space<vmem>>, vector<1x16x32xf32>
    %2 = vector.shape_cast %1 : vector<1x16x32xf32> to vector<16x32xf32>
    %c0_3 = arith.constant 0 : index
    %c0_4 = arith.constant 0 : index
    %c0_5 = arith.constant 0 : index
    %3 = vector.load %arg5[%c0_3, %c0_4, %c0_5] : memref<1x32x128xf32, #tpu.memory_space<vmem>>, vector<1x32x128xf32>
    %4 = vector.shape_cast %3 : vector<1x32x128xf32> to vector<32x128xf32>
    %cst = arith.constant dense<0.000000e+00> : vector<16x128xf32>
    %5 = tpu.matmul %2, %4, %cst {dimension_numbers = #tpu.dot_dimension_numbers<[1], [0], [0], [1], [0, 0, 1, 1], [], []>, precision = #tpu.contract_precision<fp32>} : vector<16x32xf32>, vector<32x128xf32>, vector<16x128xf32> -> vector<16x128xf32>
    %6 = vector.broadcast %0 : f32 to vector<16x128xf32>
    %7 = arith.mulf %6, %5 : vector<16x128xf32>
    %c0_6 = arith.constant 0 : index
    %c0_7 = arith.constant 0 : index
    %c0_8 = arith.constant 0 : index
    %8 = vector.load %arg6[%c0_6, %c0_7, %c0_8] : memref<1x16x1xf32, #tpu.memory_space<vmem>>, vector<1x16x1xf32>
    %9 = vector.shape_cast %8 : vector<1x16x1xf32> to vector<16x1xf32>
    %10 = vector.broadcast %9 : vector<16x1xf32> to vector<16x128xf32>
    %11 = arith.addf %7, %10 : vector<16x128xf32>
    %c0_9 = arith.constant 0 : index
    %c0_10 = arith.constant 0 : index
    %c0_11 = arith.constant 0 : index
    %12 = vector.load %arg7[%c0_9, %c0_10, %c0_11] : memref<1x1x128xf32, #tpu.memory_space<vmem>>, vector<1x1x128xf32>
    %13 = vector.shape_cast %12 : vector<1x1x128xf32> to vector<1x128xf32>
    %14 = vector.broadcast %13 : vector<1x128xf32> to vector<16x128xf32>
    %15 = arith.addf %11, %14 : vector<16x128xf32>
    %cst_12 = arith.constant 0.000000e+00 : f32
    %16 = vector.broadcast %cst_12 : f32 to vector<16x128xf32>
    %17 = arith.minimumf %15, %16 : vector<16x128xf32>
    %18 = math.exp %17 : vector<16x128xf32>
    %c0_13 = arith.constant 0 : index
    %c0_14 = arith.constant 0 : index
    %c0_15 = arith.constant 0 : index
    %19 = vector.load %arg8[%c0_13, %c0_14, %c0_15] : memref<1x16x128xf32, #tpu.memory_space<vmem>>, vector<1x16x128xf32>
    %20 = vector.shape_cast %19 : vector<1x16x128xf32> to vector<16x128xf32>
    %21 = vector.shape_cast %18 : vector<16x128xf32> to vector<1x16x128xf32>
    tpu.vector_store %arg8[%c0_13, %c0_14, %c0_15], %21 {strides = array<i32>} : memref<1x16x128xf32, #tpu.memory_space<vmem>>, vector<1x16x128xf32>,
    return
  }
  func.func @transform_0(%arg0: i32, %arg1: i32, %arg2: i32) -> i32 {
    %c0_i32 = arith.constant 0 : i32
    %c0_i32_0 = arith.constant 0 : i32
    return %c0_i32 : i32
  }
  func.func @transform_1(%arg0: i32, %arg1: i32, %arg2: i32) -> (i32, i32, i32) {
    %c0_i32 = arith.constant 0 : i32
    %c0_i32_0 = arith.constant 0 : i32
    return %arg0, %arg1, %c0_i32 : i32, i32, i32
  }
  func.func @transform_2(%arg0: i32, %arg1: i32, %arg2: i32) -> (i32, i32, i32) {
    %c0_i32 = arith.constant 0 : i32
    %c0_i32_0 = arith.constant 0 : i32
    return %arg0, %c0_i32, %arg2 : i32, i32, i32
  }
  func.func @transform_3(%arg0: i32, %arg1: i32, %arg2: i32) -> (i32, i32, i32) {
    %c0_i32 = arith.constant 0 : i32
    %c0_i32_0 = arith.constant 0 : i32
    return %arg0, %arg1, %c0_i32 : i32, i32, i32
  }
  func.func @transform_4(%arg0: i32, %arg1: i32, %arg2: i32) -> (i32, i32, i32) {
    %c0_i32 = arith.constant 0 : i32
    %c0_i32_0 = arith.constant 0 : i32
    return %arg0, %c0_i32, %arg2 : i32, i32, i32
  }
  func.func @transform_5(%arg0: i32, %arg1: i32, %arg2: i32) -> (i32, i32, i32) {
    %c0_i32 = arith.constant 0 : i32
    return %arg0, %arg1, %arg2 : i32, i32, i32
  }
}

</mosaic_0001>

<bundles_post_ra>
// kernel: tpu_custom_call.1
= control target key start
LH: loop header
LB: loop body
LE: loop exit
PB: predicated region body
PF: predicated region fallthrough
CT: control target
= control target key end

     0   :  { %s1728_s0 = inlined_call_operand.<no memory space> [shape: f32[1], index: 0, kind: input, shape index: {}]   ;;  %s1729_s1 = inlined_call_operand.vmem [shape: f32[2,16,32], index: 1, kind: input, shape index: {}]   ;;  %s1730_s2 = inlined_call_operand.hbm [shape: f32[2,32,128], index: 2, kind: input, shape index: {}]   ;;  %s1731_s3 = inlined_call_operand.vmem [shape: f32[2,16,1], index: 3, kind: input, shape index: {}]   ;;  %s1732_s4 = inlined_call_operand.vmem [shape: f32[2,1,128], index: 4, kind: input, shape index: {}]   ;;  %s1733_s5 = inlined_call_operand.hbm [shape: f32[2,16,128], index: 5, kind: output, shape index: {}]  }
   0x1   :  { %10 = sst [smem:[#allocation2]] %s1728_s0 }
   0x2   :  { %11 = vsyncpa [#allocation4], 0 }
   0x3   :  { %13 = vsyncpa [#allocation4 + $0x1], 0 }
   0x4   :  { %14 = vsyncpa [#allocation5], 0 }
   0x5   :  { %16 = vsyncpa [#allocation5 + $0x1], 0  ;;  %s1509_s20 = smov 0   ;;  %s1511_s21 = smov 0  }
   0x6   :  { %s1513_s22 = smov 0   ;;  %s1515_s23 = smov 0  }
   0x7   :  { %s1517_s24 = smov 0   ;;  %s1519_s25 = smov 0  }
   0x8 LB: > { %s1099_s0 = sadd.s32 4294967295, %s1467_s25   ;;  %s1100_s26 = sadd.s32 4294967294, %s1467_s25   ;;  %s1467_s25 = sphi %s1519_s25, %s22_s25   ;;  %s1463_s24 = sphi %s1517_s24, %s1748_s24   ;;  %s1459_s23 = sphi %s1515_s23, %s1747_s23   ;;  %s1455_s22 = sphi %s1513_s22, %s1746_s22   ;;  %s1451_s21 = sphi %s1511_s21, %s1745_s21   ;;  %s1447_s20 = sphi %s1509_s20, %s1744_s20  }
   0x9   : > { %s41_s27 = sadd.s32 1, %s1463_s24  ;;  %s99_s28 = sadd.s32 1, %s1455_s22 }
   0xa   : > { %p43_p0 = scmp.ge.s32.totalorder %s41_s27, 2  ;;  %p106_p1 = scmp.ne.s32.totalorder %s1455_s22, %s1451_s21 }
   0xb   : > { %p107_p2 = scmp.eq.s32.totalorder %s1467_s25, 0  ;;  %p112_p3 = scmp.ne.s32.totalorder %s1451_s21, %s1447_s20 }
   0xc   : > { %s1750_s27 = smov (%p43_p0, %s41_s27), 0  ;;  %p113_p5 = scmp.eq.s32.totalorder %s1099_s0, 0 }
   0xd   : > { %p1550_p4 = por %p107_p2, %p106_p1  ;;  %s94_s30 = ssub.s32 %s1463_s24, %s1750_s27 }
   0xe   : > { %p196_p6 = scmp.eq.s32.totalorder %s1099_s0, 1  ;;  %p97_p7 = scmp.eq.s32.totalorder %s94_s30, 0 }
   0xf   : > { %p1556_p8 = por %p113_p5, %p112_p3  ;;  %p202_p10 = scmp.eq.s32.totalorder %s1100_s26, 1 }
  0x10   : > { %p1560_p9 = por %p196_p6, %p106_p1  ;;  %p1295_p13 = scmp.lt.s32.totalorder %s1467_s25, 2 }
  0x11   : > { %s1565_s8 = scalar_select %p97_p7, %s1455_s22, %s99_s28  }
  0x12   : > { %s1737_s7 = scalar_select %p1560_p9, 1, 0 }
  0x13   : > { %p1567_p11 = por %p202_p10, %p112_p3  ;;  %s238_s10 = sand.u32 1, %s1455_s22  }
  0x14   : > { %s1103_s11 = sshll.u32 %s238_s10, 5  ;;  %s1119_s12 = sshll.u32 %s1463_s24, 9 }
  0x15   : > { %s1738_s9 = scalar_select %p1567_p11, 1, 0 }
  0x16   : > { %s1578_s15 = scalar_lea.hbm %s1730_s2, %s1119_s12  ;;  %s242_s16 = scalar_lea.vmem [#allocation3], %s1103_s11 }
  0x17   : > { %s250_s17 = sshll.u32 %s242_s16, 4  ;;  %p1584_p0 = pnand %p1295_p13, %p1550_p4  ;;  %s1580_s17 = int_to_ptr.vmem [resolvable:$true] %s250_s17 }
  0x18   : > { %s1589_s19 = scalar_lea.sflag [#allocation4], %s238_s10  ;;  %s1355_s0 = scalar_lea.hbm %s1578_s15, 512 }
  0x19   : > { %p1356_p2 = scmp.ne.s32.totalorder %s1578_s15, %s1355_s0  ;;  %p1357_p3 = pneg %p1584_p0 }
  0x1a   : > { %s1360_s29 = scalar_lea.hbm %s1730_s2, 1024  ;;  %p1361_p4 = scmp.lt.u32.totalorder %s1578_s15, %s1730_s2 }
  0x1b   : > { %p1358_p5 = pnand %p1357_p3, %p1356_p2  ;;  %p1362_p7 = scmp.lt.u32.totalorder %s1360_s29, %s1355_s0 }
  0x1c   : > { %p1364_p13 = scmp.lt.u32.totalorder %s1355_s0, %s1578_s15 }
  0x1d   : > { %p1359_p6 = pneg %p1358_p5  ;;  %p1363_p10 = por %p1362_p7, %p1361_p4 }
  0x1f   : > { %p1365_p12 = por %p1364_p13, %p1363_p10 }
  0x21   : > { %p1366_p1 = pnand %p1365_p12, %p1359_p6 }
  0x23   : > { %1369 = shalt.err (!%p1366_p1)
}
  0x24   : > { %s1370_s10 = scalar_lea.vmem %s1580_s17, 512  ;;  %s1469_s12 = smov [#allocation3]  }
  0x25   : > { %p1371_p2 = scmp.ne.s32.totalorder %s1580_s17, %s1370_s10  ;;  %s1375_s13 = sshll.u32 %s1469_s12, 4  ;;  %s1376_s13 = int_to_ptr.vmem [resolvable:$false] %s1375_s13 }
  0x26   : > { %s1377_s14 = scalar_lea.vmem %s1376_s13, 1024  ;;  %p1378_p9 = scmp.lt.s32.totalorder %s1580_s17, %s1376_s13 }
  0x27   : > { %p1373_p5 = pnand %p1371_p2, %p1357_p3  ;;  %p1379_p4 = scmp.lt.s32.totalorder %s1377_s14, %s1370_s10 }
  0x29   : > { %p1374_p11 = pneg %p1373_p5  ;;  %p1380_p7 = por %p1379_p4, %p1378_p9 }
  0x2b   : > { %p1381_p10 = pnand %p1380_p7, %p1374_p11 }
  0x2d   : > { %1384 = shalt.err (!%p1381_p10)
}
  0x2e   : > { %s1470_s16 = smov 128   ;;  %s1471_s0 = smov 8  }
  0x2f   : > { %1290 = dma.hbm_to_vmem [thread:$0]  (!%p1584_p0), %s1578_s15, 512, %s1580_s17, %s1589_s19, %s1470_s16, %s1470_s16, %s1471_s0  }
  0x30   : > { %p280_p12 = scmp.lt.s32.totalorder %s1467_s25, 3  ;;  %p1740_p1 = scmp.ge.s32.totalorder %s1467_s25, 1 }
  0x32   : > { %p281_p3 = pnand %p1740_p1, %p280_p12 }
  0x33   : > { %s1621_s26 = sand.u32 (!%p281_p3), 1, %s1451_s21  }
  0x34   : > { %284 = sbr.rel (%p281_p3) target bundleno = 346 (0x15a), region = 40  ;;  %s1107_s28 = sshll.u32 (!%p281_p3), %s1621_s26, 5 }
  0x35   : > { %s287_s29 = scalar_lea.sflag (!%p281_p3), [#allocation4], %s1621_s26  ;;  %s290_s30 = scalar_lea.vmem (!%p281_p3), [#allocation3], %s1107_s28 }
  0x3b   : > { %1438 = dma.done.wait (%p1556_p8), %s287_s29, 512  }
  0x3c   : > { %1440 = vsyncadd (%p1556_p8), %s287_s29, 4294966784  ;;  %p342_p9 = scmp.lt.s32.totalorder %s1459_s23, 1  ;;  %v1472_v0 = vmov 0   ;;  %vm375_vm0 = vcmask 261120   ;;  %v371_v1 = vld [vmem:[%s290_s30] sm:$0xff]  ;;  %v372_v2 = vld [vmem:[%s290_s30 + $0x8] sm:$0xff] }
  0x3d   : > { %1350 = vset.pattern.permute.xlu0 %v1472_v0  ;;  %v373_v3 = vld [vmem:[%s290_s30 + $0x10] sm:$0xff]  ;;  %v383_v4 = vand.u32 4294901760, %v371_v1  ;;  %v386_v5 = vand.u32 4294901760, %v372_v2  ;;  %v374_v6 = vld [vmem:[%s290_s30 + $0x18] sm:$0xff]  ;;  %s368_s6 = sld [smem:[#allocation2]]  ;;  %s1108_s28 = sshll.u32 %s1621_s26, 4 }
  0x3e   : > { %s1631_s15 = scalar_select %p342_p9, %s1459_s23, 1  ;;  %v389_v7 = vand.u32 4294901760, %v373_v3  ;;  %v392_v10 = vand.u32 4294901760, %v374_v6 }
  0x3f   : > { %v1640_v14 = vpack.c.bf16 %v386_v5, %v383_v4  ;;  %v473_v17 = vsub.f32 %v371_v1, %v383_v4  ;;  %v480_v19 = vsub.f32 %v372_v2, %v386_v5  ;;  %s1122_s29 = sshll.u32 %s1459_s23, 8  ;;  %s340_s30 = scalar_lea.vmem [#allocation6], %s1108_s28 }
  0x40   : > { %s1120_s17 = sshll.u32 %s1631_s15, 4  ;;  %v1646_v18 = vpack.c.bf16 %v392_v10, %v389_v7  ;;  %v487_v20 = vsub.f32 %v373_v3, %v389_v7  ;;  %v494_v21 = vsub.f32 %v374_v6, %v392_v10  ;;  %s366_s0 = scalar_lea.vmem %s1732_s4, %s1631_s15 }
  0x41   : > { %s349_s11 = scalar_lea.vmem %s1729_s1, %s1120_s17  ;;  %s359_s13 = scalar_lea.vmem %s1731_s3, %s1120_s17  ;;  %1226 = vmatprep.subr.bf16.mxu1 %v1640_v14  ;;  %1250 = vmatprep.subr.bf16.mxu0 %v1640_v14  ;;  %v474_v24 = vand.u32 4294901760, %v473_v17  ;;  %v481_v26 = vand.u32 4294901760, %v480_v19  ;;  %v1241_v47 = vpack.c.bf16 %v480_v19, %v473_v17  ;;  %v1113_v59 = vld [vmem:[%s366_s0] ss:$0 sm:$0xff] }
  0x42   : > { %v369_v8 = vld [vmem:[%s349_s11] sm:$0xff]  ;;  %v370_v9 = vld [vmem:[%s349_s11 + $0x8] sm:$0xff]  ;;  %1228 = vmatpush3.bf16.msra.mxu1 %v1640_v14  ;;  %1252 = vmatpush3.bf16.msra.mxu0 %v1640_v14  ;;  %v488_v27 = vand.u32 4294901760, %v487_v20  ;;  %v495_v28 = vand.u32 4294901760, %v494_v21  ;;  %v1245_v48 = vpack.c.bf16 %v494_v21, %v487_v20  ;;  %s961_s15 = sshll.u32 %s340_s30, 4  ;;  %s1677_s19 = scalar_lea.hbm %s1733_s5, %s1122_s29  ;;  %s1679_s15 = int_to_ptr.vmem [resolvable:$true] %s961_s15 }
  0x43   : > { %v377_v11 = vsel %vm375_vm0, %v369_v8, 0  ;;  %v380_v12 = vsel %vm375_vm0, %v370_v9, 0  ;;  %v913_v13 = vld [vmem:[%s359_s13] sm:$0xff]  ;;  %v914_v25 = vld [vmem:[%s359_s13 + $0x8] sm:$0xff]  ;;  %1230 = vmatprep.subr.bf16.mxu1 %v1646_v18  ;;  %1254 = vmatprep.subr.bf16.mxu0 %v1646_v18  ;;  %v475_v31 = vsub.f32 %v473_v17, %v474_v24  ;;  %v482_v32 = vsub.f32 %v480_v19, %v481_v26  ;;  %s945_s11 = scalar_lea.sflag [#allocation5], %s1621_s26  ;;  %s1385_s10 = scalar_lea.vmem %s1679_s15, 256 }
  0x44   : > { %v1642_v15 = vand.u32 4294901760, %v377_v11  ;;  %v1644_v16 = vand.u32 4294901760, %v380_v12  ;;  %917 = vperm.xlu0 %1350, %v913_v13   ;;  %v1257_v33 = vpack.c.bf16 %v481_v26, %v474_v24  ;;  %v489_v34 = vsub.f32 %v487_v20, %v488_v27  ;;  %p1386_p8 = scmp.ne.s32.totalorder %s1679_s15, %s1385_s10  ;;  %p1741_p11 = scmp.ne.s32.totalorder %s1737_s7, 0 }
  0x45   : > { %v496_v35 = vsub.f32 %v494_v21, %v495_v28  ;;  %v476_v38 = vand.u32 4294901760, %v475_v31  ;;  %v483_v39 = vand.u32 4294901760, %v482_v32  ;;  %v1261_v46 = vpack.c.bf16 %v495_v28, %v488_v27  ;;  %s1473_s23 = smov [#allocation6]  }
  0x46   : > { %v452_v22 = vsub.f32 %v377_v11, %v1642_v15  ;;  %v462_v23 = vsub.f32 %v380_v12, %v1644_v16  ;;  %1232 = vmatpush3.bf16.msra.mxu1 %v1646_v18  ;;  %1256 = vmatpush3.bf16.msra.mxu0 %v1646_v18  ;;  %v490_v40 = vand.u32 4294901760, %v489_v34  ;;  %v910_v52 = vstv %s368_s6  ;;  %p1387_p0 = pnand %p1386_p8, %p1741_p11  ;;  %s1389_s12 = sshll.u32 %s1473_s23, 4  ;;  %s1390_s12 = int_to_ptr.vmem [resolvable:$false] %s1389_s12 }
  0x47   : > { %v497_v41 = vand.u32 4294901760, %v496_v35  ;;  %1258 = vmatprep.subr.bf16.mxu0 %v1257_v33  ;;  %v1233_v44 = vpack.c.bf16 %v483_v39, %v476_v38  ;;  %s1391_s13 = scalar_lea.vmem %s1390_s12, 512  ;;  %p1392_p13 = scmp.lt.s32.totalorder %s1679_s15, %s1390_s12 }
  0x48   : > { %v453_v29 = vand.u32 4294901760, %v452_v22  ;;  %v463_v30 = vand.u32 4294901760, %v462_v23  ;;  %922 = vperm.xlu0 %1350, %v914_v25   ;;  %p1388_p6 = pneg %p1387_p0  ;;  %p1393_p2 = scmp.lt.s32.totalorder %s1391_s13, %s1385_s10 }
  0x49   : > { %v1237_v45 = vpack.c.bf16 %v497_v41, %v490_v40  ;;  %1234 = vmatprep.subr.bf16.mxu1 %v1233_v44 }
  0x4a   : > { %v454_v36 = vsub.f32 %v452_v22, %v453_v29  ;;  %1200 = vmatprep.mubr.f32.mxu0 %v453_v29  ;;  %v464_v37 = vsub.f32 %v462_v23, %v463_v30  ;;  %p1394_p5 = por %p1393_p2, %p1392_p13 }
  0x4b   : > { %1201 = vmatmul.mubr.f32.vlgmr.msra.gmra.mrb[0].mxu0 %v463_v30 }
  0x4c   : > { %v455_v42 = vand.u32 4294901760, %v454_v36  ;;  %v465_v43 = vand.u32 4294901760, %v464_v37  ;;  %1260 = vmatpush3.bf16.msra.mxu0 %v1257_v33  ;;  %1211 = vmatprep.mubr.f32.mxu0 %v1642_v15  ;;  %p1395_p4 = pnand %p1394_p5, %p1388_p6 }
  0x4d   : > { %1262 = vmatprep.subr.bf16.mxu0 %v1261_v46 }
  0x4e   : > { %1167 = vmatprep.mubr.f32.mxu1 %v455_v42 }
  0x4f   : > { %1168 = vmatmul.mubr.f32.vlgmr.msra.gmra.mrb[0].mxu1 %v465_v43 }
  0x50   : > { %1236 = vmatpush3.bf16.msra.mxu1 %v1233_v44  ;;  %1178 = vmatprep.mubr.f32.mxu1 %v1642_v15 }
  0x51   : > { %1238 = vmatprep.subr.bf16.mxu1 %v1237_v45  ;;  %1264 = vmatpush3.bf16.msra.mxu0 %v1261_v46 }
  0x52   : > { %1266 = vmatprep.subr.bf16.mxu0 %v1640_v14 }
  0x54   : > { %1240 = vmatpush3.bf16.msra.mxu1 %v1237_v45  ;;  %1212 = vmatmul.mubr.f32.vlgmr.msra.gmra.mrb[0].mxu0 %v1644_v16 }
  0x55   : > { %1242 = vmatprep.subr.bf16.mxu1 %v1241_v47  ;;  %1268 = vmatpush3.bf16.msra.mxu0 %v1640_v14 }
  0x56   : > { %1270 = vmatprep.subr.bf16.mxu0 %v1646_v18  ;;  %1222 = vmatprep.mubr.f32.mxu0 %v1642_v15 }
  0x57   : > { %1179 = vmatmul.mubr.f32.vlgmr.msra.gmra.mrb[0].mxu1 %v1644_v16 }
  0x58   : > { %1244 = vmatpush3.bf16.msra.mxu1 %v1241_v47  ;;  %1189 = vmatprep.mubr.f32.mxu1 %v452_v22 }
  0x59   : > { %1246 = vmatprep.subr.bf16.mxu1 %v1245_v48  ;;  %1272 = vmatpush3.bf16.msra.mxu0 %v1646_v18 }
  0x5c   : > { %1248 = vmatpush3.bf16.msra.mxu1 %v1245_v48  ;;  %1223 = vmatmul.mubr.f32.vlgmr.msra.gmra.mrb[0].mxu0 %v1644_v16 }
  0x5f   : > { %1190 = vmatmul.mubr.f32.vlgmr.msra.gmra.mrb[0].mxu1 %v462_v23 }
  0xc3   : > { %v918_v49 = vpop.permute.xlu0 %917 }
  0xc7   : > { %v923_v60 = vpop.permute.xlu0 %922 }
 0x12f   : > { %v1224_v51 = vpop.f32.mrb[0].mxu0 }
 0x130   : > { %v900_v55 = vpop.f32.mrb[1].mxu0 }
 0x132   : > { %v1191_v50 = vpop.f32.mrb[0].mxu1 }
 0x133   : > { %v1273_v53 = vadd.f32 %v1224_v51, %v1191_v50  ;;  %v644_v54 = vpop.f32.mrb[1].mxu1 }
 0x134   : > { %v1274_v56 = vadd.f32 %v900_v55, %v644_v54 }
 0x135   : > { %v912_v57 = vmul.f32 %v1273_v53, %v910_v52 }
 0x136   : > { %v911_v58 = vmul.f32 %v1274_v56, %v910_v52 }
 0x137   : > { %v926_v61 = vadd.f32 %v923_v60, %v912_v57 }
 0x138   : > { %v925_v62 = vadd.f32 %v918_v49, %v911_v58 }
 0x139   : > { %v935_v63 = vadd.f32 %v1113_v59, %v926_v61 }
 0x13a   : > { %v934_v0 = vadd.f32 %v1113_v59, %v925_v62 }
 0x13b   : > { %v937_v1 = vmin.f32 %v935_v63, 0.0 }
 0x13c   : > { %v936_v2 = vmin.f32 %v934_v0, 0.0 }
 0x13d   : > { %v940_v3 = vmul.f32 1.442695, %v937_v1 }
 0x13e   : > { %v938_v4 = vmul.f32 1.442695, %v936_v2 }
 0x13f   : > { %1351 = vpow2.f32 %v940_v3 }
 0x140   : > { %1353 = vpow2.f32 %v938_v4 }
 0x149   : > { %v1352_v5 = vpop.eup %1351 }
 0x14a   : > { %v1354_v6 = vpop.eup %1353  ;;  %943 = vst [vmem:[%s340_s30 + $0x8] sm:$0xff] %v1352_v5 }
 0x14b   : > { %942 = vst [vmem:[%s340_s30] sm:$0xff] %v1354_v6 }
 0x14c   : > { %1398 = shalt.err (!%p1395_p4)
}
 0x14d   : > { %s1399_s6 = scalar_lea.hbm %s1677_s19, 256  ;;  %s1403_s0 = scalar_lea.hbm %s1733_s5, 512 }
 0x14e   : > { %p1400_p7 = scmp.ne.s32.totalorder %s1677_s19, %s1399_s6  ;;  %p1404_p1 = scmp.lt.u32.totalorder %s1677_s19, %s1733_s5 }
 0x14f   : > { %p1405_p3 = scmp.lt.u32.totalorder %s1403_s0, %s1399_s6  ;;  %p1407_p8 = scmp.lt.u32.totalorder %s1399_s6, %s1677_s19 }
 0x150   : > { %p1401_p10 = pnand %p1400_p7, %p1741_p11 }
 0x151   : > { %p1406_p9 = por %p1405_p3, %p1404_p1 }
 0x152   : > { %p1402_p12 = pneg %p1401_p10 }
 0x153   : > { %p1408_p0 = por %p1407_p8, %p1406_p9 }
 0x155   : > { %p1409_p6 = pnand %p1408_p0, %p1402_p12 }
 0x157   : > { %1412 = shalt.err (!%p1409_p6)
}
 0x158   : > { %s1474_s30 = smov 128   ;;  %s1475_s17 = smov 8  }
 0x159   : > { %1285 = dma.vmem_to_hbm [thread:$0]  (%p1741_p11), %s1679_s15, 256, %s1677_s19, %s945_s11, %s1474_s30, %s1474_s30, %s1475_s17  }
 0x15a PF: > { %s976_s18 = sand.u32 1, %s1447_s20   ;;  %p1742_p13 = scmp.ne.s32.totalorder %s1738_s9, 0 }
 0x15b   : > { %p1743_p2 = scmp.ge.s32.totalorder %s1467_s25, 2  ;;  %s977_s10 = scalar_lea.sflag [#allocation5], %s976_s18 }
 0x15d   : > { %p1292_p5 = pnand %p1743_p2, %p1742_p13 }
 0x15f   : > { %1442 = dma.done.wait (!%p1292_p5), %s977_s10, 256  }
 0x160   : > { %1444 = vsyncadd (!%p1292_p5), %s977_s10, 4294967040  ;;  %s22_s25 = sadd.s32 1, %s1467_s25   ;;  %s1744_s20 = smov %s1451_s21 }
 0x161   : > { %p19_p4 = scmp.ge.s32.totalorder %s22_s25, 4   ;;  %s1745_s21 = smov %s1455_s22 }
 0x162   : > { %s1746_s22 = smov %s1565_s8  ;;  %s1747_s23 = smov %s1463_s24 }
 0x163   : > { %s1748_s24 = smov %s1750_s27  ;;  %21 = sbr.rel (!%p19_p4) target bundleno = 8 (0x8), region = 94 }
 0x16a   :  { %982 = vsyncpa [#allocation4], 1 }
 0x16b   :  { %984 = vsyncpa [#allocation4 + $0x1], 1 }
 0x16c   :  { %985 = vsyncpa [#allocation5], 1 }
 0x16d   :  { %987 = vsyncpa [#allocation5 + $0x1], 1 }

</bundles_post_ra>
